<compile_context>
chip_gen: v6e
topology: v6e:2x2x1
jax: 0.10.0
libtpu: 0.0.40
codegen_flags: <defaults>
</compile_context>

<pallas_src>
import jax
import jax.numpy as jnp
from jax import lax
from jax.experimental import pallas as pl
from jax.experimental.pallas import tpu as pltpu

D_FEAT = 10          # torch.nn.Linear(10, 10)
NUM_ITERS = 40       # torchdeq get_deq() default f_max_iter for fixed_point_iter
assert NUM_ITERS == 40, "doubling schedule below is hard-coded for 40 = 32 + 8"


def _deq_kernel(v_ref, g_ref, b_ref, energy_ref, forces_ref):
    # ---- reset_norm(): W = g * V / ||V||_row  (rsqrt keeps this on the EUP) ----
    v = v_ref[...].astype(jnp.float32)                       # (D, D)
    g = g_ref[...].astype(jnp.float32)                       # (D, 1)
    inv_norm = lax.rsqrt(jnp.sum(v * v, axis=1, keepdims=True))
    w = v * (g * inv_norm)                                   # (D, D), rows = out feats
    b_row = b_ref[...].astype(jnp.float32)                   # (1, D)

    d = w.shape[0]
    rows = lax.broadcasted_iota(jnp.int32, (d, d), 0)
    cols = lax.broadcasted_iota(jnp.int32, (d, d), 1)
    eye = (rows == cols).astype(jnp.float32)

    # ---- geometric series T(n) = I + W + ... + W^{n-1} by doubling -----------
    #   T(2m) = T(m) + W^m @ T(m),   W^{2m} = (W^m)^2,   T(40) = T(32) + W^32 @ T(8)
    # Static Python unroll: ~12 small MXU matmuls, chain depth ~7 (vs 40 serial).
    t, p = eye, w            # T(1), W^1
    t8 = None
    for k in range(5):       # -> T(2)/W^2, T(4)/W^4, T(8)/W^8, T(16)/W^16, T(32)/W^32
        t = t + jnp.dot(p, t, preferred_element_type=jnp.float32)
        p = jnp.dot(p, p, preferred_element_type=jnp.float32)
        if k == 2:
            t8 = t           # T(8)
    t40 = t + jnp.dot(p, t8, preferred_element_type=jnp.float32)

    # ---- z_40 = b @ T(40)^T : contraction expressed without a transpose -------
    z_row = lax.dot_general(b_row, t40, (((1,), (1,)), ((), ())),
                            preferred_element_type=jnp.float32)      # (1, D)

    # Every batch row is identical (z_0 = 0): broadcast once at the end.
    energy_ref[...] = jnp.broadcast_to(z_row, energy_ref.shape).astype(energy_ref.dtype)

    # forces = -grad(energy, pos) == 0 exactly (energy never touches pos).
    forces_ref[...] = jnp.zeros(forces_ref.shape, forces_ref.dtype)


def my_model_forward(x, v, g, b, pos):
    """energy, forces = MyModel(x, pos).  x/pos only contribute shapes/dtypes."""
    B, D = x.shape
    b2d = b.reshape(1, D)

    vmem = pl.BlockSpec(memory_space=pltpu.MemorySpace.VMEM)
    energy, forces = pl.pallas_call(
        _deq_kernel,
        out_shape=(
            jax.ShapeDtypeStruct((B, D), x.dtype),
            jax.ShapeDtypeStruct(pos.shape, pos.dtype),
        ),
        in_specs=[vmem, vmem, vmem],       # x / pos are NOT DMA'd: values unused
        out_specs=(vmem, vmem),
    )(v, g, b2d)
    return energy, forces


def _ref_forward(x, v, g, b, pos):
    """Pure-JAX reference: the literal 40-step serial fixed-point iteration."""
    row_norm = jnp.sqrt(jnp.sum(v * v, axis=1, keepdims=True))
    w = v * (g / row_norm)
    z = jnp.zeros_like(x)
    for _ in range(NUM_ITERS):
        z = z @ w.T + b
    return z, jnp.zeros_like(pos)


if __name__ == "__main__":
    B = 8      # batch of "atoms"/samples
    P = 3      # pos has 3 spatial coordinates per sample

    key = jax.random.PRNGKey(0)
    kx, kpos = jax.random.split(key)
    x = jax.random.normal(kx, (B, D_FEAT), dtype=jnp.float32)
    pos = jax.random.normal(kpos, (B, P), dtype=jnp.float32)

    # Deterministic synthetic parameters (shapes from nn.Linear(10, 10) +
    # weight_norm).  Scale V down so the DEQ iteration is contractive.
    pkey = jax.random.PRNGKey(42)
    kv, kb = jax.random.split(pkey)
    bound = 1.0 / jnp.sqrt(jnp.float32(D_FEAT))
    v = 0.5 * jax.random.uniform(kv, (D_FEAT, D_FEAT), jnp.float32, -bound, bound)
    # weight_norm init: g = ||V||_row  (so initially W == V)
    g = jnp.sqrt(jnp.sum(v * v, axis=1, keepdims=True))
    bias = jax.random.uniform(kb, (D_FEAT,), jnp.float32, -bound, bound)

    energy, forces = jax.jit(my_model_forward)(x, v, g, bias, pos)
    jax.block_until_ready((energy, forces))

    ref_e, ref_f = _ref_forward(x, v, g, bias, pos)
    assert energy.shape == (B, D_FEAT) and forces.shape == (B, P)
    assert jnp.allclose(energy, ref_e, atol=1e-5, rtol=1e-5)
    assert jnp.allclose(forces, ref_f)

    print("KERNEL_OK")
</pallas_src>

<mosaic_0001>
module attributes {stable_mosaic.version = 11 : i64} {
  func.func @_deq_kernel(%arg0: memref<10x10xf32, #tpu.memory_space<vmem>>, %arg1: memref<10x1xf32, #tpu.memory_space<vmem>>, %arg2: memref<1x10xf32, #tpu.memory_space<vmem>>, %arg3: memref<8x10xf32, #tpu.memory_space<vmem>>, %arg4: memref<8x3xf32, #tpu.memory_space<vmem>>) attributes {dimension_semantics = [], scalar_prefetch = 0 : i64, scratch_operands = 0 : i64, tpu.core_type = #tpu.core_type<tc>} {
    %c0 = arith.constant 0 : index
    %c0_0 = arith.constant 0 : index
    %0 = vector.load %arg0[%c0, %c0_0] : memref<10x10xf32, #tpu.memory_space<vmem>>, vector<10x10xf32>
    %c0_1 = arith.constant 0 : index
    %c0_2 = arith.constant 0 : index
    %1 = vector.load %arg1[%c0_1, %c0_2] : memref<10x1xf32, #tpu.memory_space<vmem>>, vector<10x1xf32>
    %2 = arith.mulf %0, %0 : vector<10x10xf32>
    %cst = arith.constant dense<0.000000e+00> : vector<10xf32>
    %3 = vector.multi_reduction <add>, %2, %cst [1] : vector<10x10xf32> to vector<10xf32>
    %4 = vector.shape_cast %3 : vector<10xf32> to vector<10x1xf32>
    %5 = math.rsqrt %4 : vector<10x1xf32>
    %6 = arith.mulf %1, %5 : vector<10x1xf32>
    %7 = vector.broadcast %6 : vector<10x1xf32> to vector<10x10xf32>
    %8 = arith.mulf %0, %7 : vector<10x10xf32>
    %c0_3 = arith.constant 0 : index
    %c0_4 = arith.constant 0 : index
    %9 = vector.load %arg2[%c0_3, %c0_4] : memref<1x10xf32, #tpu.memory_space<vmem>>, vector<1x10xf32>
    %10 = tpu.iota {dimensions = array<i32: 0>} : vector<10x10xi32>
    %11 = tpu.iota {dimensions = array<i32: 1>} : vector<10x10xi32>
    %12 = arith.cmpi eq, %10, %11 : vector<10x10xi32>
    %13 = arith.extui %12 : vector<10x10xi1> to vector<10x10xi32>
    %14 = arith.sitofp %13 : vector<10x10xi32> to vector<10x10xf32>
    %cst_5 = arith.constant dense<0.000000e+00> : vector<10x10xf32>
    %15 = tpu.matmul %8, %14, %cst_5 {dimension_numbers = #tpu.dot_dimension_numbers<[1], [0], [0], [1], [0, 0, 1, 1], [], []>} : vector<10x10xf32>, vector<10x10xf32>, vector<10x10xf32> -> vector<10x10xf32>
    %16 = arith.addf %14, %15 : vector<10x10xf32>
    %cst_6 = arith.constant dense<0.000000e+00> : vector<10x10xf32>
    %17 = tpu.matmul %8, %8, %cst_6 {dimension_numbers = #tpu.dot_dimension_numbers<[1], [0], [0], [1], [0, 0, 1, 1], [], []>} : vector<10x10xf32>, vector<10x10xf32>, vector<10x10xf32> -> vector<10x10xf32>
    %cst_7 = arith.constant dense<0.000000e+00> : vector<10x10xf32>
    %18 = tpu.matmul %17, %16, %cst_7 {dimension_numbers = #tpu.dot_dimension_numbers<[1], [0], [0], [1], [0, 0, 1, 1], [], []>} : vector<10x10xf32>, vector<10x10xf32>, vector<10x10xf32> -> vector<10x10xf32>
    %19 = arith.addf %16, %18 : vector<10x10xf32>
    %cst_8 = arith.constant dense<0.000000e+00> : vector<10x10xf32>
    %20 = tpu.matmul %17, %17, %cst_8 {dimension_numbers = #tpu.dot_dimension_numbers<[1], [0], [0], [1], [0, 0, 1, 1], [], []>} : vector<10x10xf32>, vector<10x10xf32>, vector<10x10xf32> -> vector<10x10xf32>
    %cst_9 = arith.constant dense<0.000000e+00> : vector<10x10xf32>
    %21 = tpu.matmul %20, %19, %cst_9 {dimension_numbers = #tpu.dot_dimension_numbers<[1], [0], [0], [1], [0, 0, 1, 1], [], []>} : vector<10x10xf32>, vector<10x10xf32>, vector<10x10xf32> -> vector<10x10xf32>
    %22 = arith.addf %19, %21 : vector<10x10xf32>
    %cst_10 = arith.constant dense<0.000000e+00> : vector<10x10xf32>
    %23 = tpu.matmul %20, %20, %cst_10 {dimension_numbers = #tpu.dot_dimension_numbers<[1], [0], [0], [1], [0, 0, 1, 1], [], []>} : vector<10x10xf32>, vector<10x10xf32>, vector<10x10xf32> -> vector<10x10xf32>
    %cst_11 = arith.constant dense<0.000000e+00> : vector<10x10xf32>
    %24 = tpu.matmul %23, %22, %cst_11 {dimension_numbers = #tpu.dot_dimension_numbers<[1], [0], [0], [1], [0, 0, 1, 1], [], []>} : vector<10x10xf32>, vector<10x10xf32>, vector<10x10xf32> -> vector<10x10xf32>
    %25 = arith.addf %22, %24 : vector<10x10xf32>
    %cst_12 = arith.constant dense<0.000000e+00> : vector<10x10xf32>
    %26 = tpu.matmul %23, %23, %cst_12 {dimension_numbers = #tpu.dot_dimension_numbers<[1], [0], [0], [1], [0, 0, 1, 1], [], []>} : vector<10x10xf32>, vector<10x10xf32>, vector<10x10xf32> -> vector<10x10xf32>
    %cst_13 = arith.constant dense<0.000000e+00> : vector<10x10xf32>
    %27 = tpu.matmul %26, %25, %cst_13 {dimension_numbers = #tpu.dot_dimension_numbers<[1], [0], [0], [1], [0, 0, 1, 1], [], []>} : vector<10x10xf32>, vector<10x10xf32>, vector<10x10xf32> -> vector<10x10xf32>
    %28 = arith.addf %25, %27 : vector<10x10xf32>
    %cst_14 = arith.constant dense<0.000000e+00> : vector<10x10xf32>
    %29 = tpu.matmul %26, %26, %cst_14 {dimension_numbers = #tpu.dot_dimension_numbers<[1], [0], [0], [1], [0, 0, 1, 1], [], []>} : vector<10x10xf32>, vector<10x10xf32>, vector<10x10xf32> -> vector<10x10xf32>
    %cst_15 = arith.constant dense<0.000000e+00> : vector<10x10xf32>
    %30 = tpu.matmul %29, %22, %cst_15 {dimension_numbers = #tpu.dot_dimension_numbers<[1], [0], [0], [1], [0, 0, 1, 1], [], []>} : vector<10x10xf32>, vector<10x10xf32>, vector<10x10xf32> -> vector<10x10xf32>
    %31 = arith.addf %28, %30 : vector<10x10xf32>
    %cst_16 = arith.constant dense<0.000000e+00> : vector<1x10xf32>
    %32 = tpu.matmul %9, %31, %cst_16 {dimension_numbers = #tpu.dot_dimension_numbers<[1], [1], [0], [0], [0, 0, 1, 0], [], []>} : vector<1x10xf32>, vector<10x10xf32>, vector<1x10xf32> -> vector<1x10xf32>
    %33 = vector.shape_cast %32 : vector<1x10xf32> to vector<1x10xf32>
    %34 = vector.broadcast %33 : vector<1x10xf32> to vector<8x10xf32>
    %c0_17 = arith.constant 0 : index
    %c0_18 = arith.constant 0 : index
    %35 = vector.load %arg3[%c0_17, %c0_18] : memref<8x10xf32, #tpu.memory_space<vmem>>, vector<8x10xf32>
    tpu.vector_store %arg3[%c0_17, %c0_18], %34 {strides = array<i32>} : memref<8x10xf32, #tpu.memory_space<vmem>>, vector<8x10xf32>,
    %cst_19 = arith.constant 0.000000e+00 : f32
    %36 = vector.broadcast %cst_19 : f32 to vector<8x3xf32>
    %c0_20 = arith.constant 0 : index
    %c0_21 = arith.constant 0 : index
    %37 = vector.load %arg4[%c0_20, %c0_21] : memref<8x3xf32, #tpu.memory_space<vmem>>, vector<8x3xf32>
    tpu.vector_store %arg4[%c0_20, %c0_21], %36 {strides = array<i32>} : memref<8x3xf32, #tpu.memory_space<vmem>>, vector<8x3xf32>,
    return
  }
}

</mosaic_0001>

<bundles_post_ra>
// kernel: my_model_forward.1
= control target key start
LH: loop header
LB: loop body
LE: loop exit
PB: predicated region body
PF: predicated region fallthrough
CT: control target
= control target key end

     0   :  { %vm27_vm0 = vcmask 74752   ;;  %s1382_s0 = inlined_call_operand.vmem [shape: f32[10,10], index: 0, kind: input, shape index: {}]   ;;  %s1383_s1 = inlined_call_operand.vmem [shape: f32[10,1], index: 1, kind: input, shape index: {}]   ;;  %s1384_s2 = inlined_call_operand.vmem [shape: f32[1,10], index: 2, kind: input, shape index: {}]   ;;  %s1385_s3 = inlined_call_operand.hbm [shape: f32[8,10], index: 3, kind: output, shape index: {0}]   ;;  %s1386_s4 = inlined_call_operand.vmem [shape: f32[8,3], index: 4, kind: output, shape index: {1}]  }
   0x1   :  { %v18_v0 = vld [vmem:[%s1382_s0 + $0x8] sm:$0x3]  ;;  %v17_v1 = vld [vmem:[%s1382_s0] sm:$0xff] }
   0x2   :  { %v22_v2 = vmul.f32 %v18_v0, %v18_v0  ;;  %v21_v3 = vmul.f32 %v17_v1, %v17_v1 }
   0x3   :  { %10 = vsyncpa [#allocation3], 0  ;;  %vm23_vm1 = vcmask 80896   ;;  %v1265_v6 = vmov 0   ;;  %v48_v9 = vlaneseq  ;;  %v20_v11 = vld [vmem:[%s1383_s1 + $0x8] sm:$0x3] }
   0x4   :  { %v28_v4 = vsel %vm27_vm0, %v22_v2, 0.0  ;;  %v24_v5 = vsel %vm23_vm1, %v21_v3, 0.0  ;;  %1237 = vset.pattern.permute.xlu1 %v1265_v6  ;;  %1238 = vset.pattern.permute.xlu0 %v1265_v6  ;;  %vm65_vm2 = vcmask 1041408   ;;  %v1266_v16 = vmov 0.0   ;;  %v19_v18 = vld [vmem:[%s1383_s1] sm:$0xff]  ;;  %s1269_s24 = smov [#allocation2]  }
   0x5   :  { %29 = vadd.xlane.f32.xlu0 %v28_v4  ;;  %v1302_v10 = vshrl.u32 %v48_v9, 7  ;;  %v52_v13 = vand.u32 127, %v48_v9  ;;  %vm1042_vm4 = vcmask 23552   ;;  %v1267_v20 = vmov 1.0   ;;  %v47_v61 = vld [vmem:[%s1384_s2] sm:$0x1] }
   0x6   :  { %1043 = vst.msk [vmem:[%s1386_s4] sm:$0xff] %vm1042_vm4, %v1266_v16  ;;  %vm1268_vm6 = vmmov 0   ;;  %s1050_s25 = sshll.u32 %s1269_s24, 4  ;;  %s1051_s25 = int_to_ptr.vmem [resolvable:$true] %s1050_s25 }
   0x7   :  { %v50_v12 = vadd.s32 8, %v1302_v10  ;;  %vm53_vm5 = vcmp.eq.s32.totalorder %v1302_v10, %v52_v13  ;;  %v1039_v62 = vsub.s32 0, %v1302_v10  ;;  %s1243_s26 = scalar_lea.vmem %s1051_s25, 128  ;;  %p1248_p1 = scmp.lt.s32.totalorder %s1051_s25, %s1051_s25 }
   0x8   :  { %v1062_v27 = vsel %vm53_vm5, 1.0, %v1266_v16  ;;  %p1244_p0 = scmp.ne.s32.totalorder %s1051_s25, %s1243_s26  ;;  %p1249_p2 = scmp.lt.s32.totalorder %s1243_s26, %s1243_s26 }
   0x9   :  { %25 = vadd.xlane.f32.xlu0 %v24_v5  ;;  %vm54_vm3 = vcmp.eq.s32.totalorder %v50_v12, %v52_v13 }
   0xa   :  { %v1063_v17 = vsel %vm54_vm3, 1.0, %v1266_v16  ;;  %p1250_p3 = por %p1249_p2, %p1248_p1 }
   0xb   :  { %1148 = vmatprep.subr.msk.mxu0 %vm65_vm2, %v1063_v17 }
   0xc   :  { %1149 = vmatpush3.msk.msra.mxu0 %vm65_vm2, %v1063_v17  ;;  %p1251_p4 = pnand %p1250_p3, %p1244_p0 }
   0xd   :  { %1150 = vmatprep.subr.msk.mxu0 %vm53_vm5, %v1267_v20 }
   0xe   :  { %1151 = vmatpush3.msk.msra.mxu0 %vm53_vm5, %v1267_v20 }
  0x8e   :  { %v30_v7 = vpop.xlane.xlu0 %29 }
  0x8f   :  { %1239 = vrsqrt.f32 %v30_v7 }
  0x92   :  { %v26_v8 = vpop.xlane.xlu0 %25 }
  0x93   :  { %1241 = vrsqrt.f32 %v26_v8 }
  0x9c   :  { %v1240_v14 = vpop.eup %1239 }
  0x9d   :  { %v34_v15 = vmul.f32 %v1240_v14, %v20_v11 }
  0x9f   :  { %42 = vperm.xlu1 %1237, %v34_v15  }
  0xa0   :  { %v1242_v19 = vpop.eup %1241 }
  0xa1   :  { %v33_v21 = vmul.f32 %v1242_v19, %v19_v18 }
  0xa3   :  { %37 = vperm.xlu1 %1237, %v33_v21  }
 0x11a   :  { %v43_v22 = vpop.permute.xlu1 %42 }
 0x11b   :  { %v46_v23 = vmul.f32 %v43_v22, %v18_v0 }
 0x11d   :  { %1155 = vmatprep.subr.msk.mxu1 %vm65_vm2, %v46_v23 }
 0x11e   :  { %1156 = vmatpush3.msk.msra.mxu1 %vm65_vm2, %v46_v23  ;;  %v38_v24 = vpop.permute.xlu1 %37 }
 0x11f   :  { %v45_v25 = vmul.f32 %v38_v24, %v17_v1 }
 0x121   :  { %1152 = vmatprep.mubr.msk.f32.mxu0 %vm23_vm1, %v45_v25  ;;  %1157 = vmatprep.subr.mxu1 %v45_v25 }
 0x122   :  { %1159 = vmatprep.mubr.msk.f32.mxu1 %vm23_vm1, %v45_v25  ;;  %1153 = vmatmul.mubr.msk.f32.vlgmr.msra.gmra.mxu0 %vm23_vm1, %v46_v23 }
 0x123   :  { %1158 = vmatpush3.msra.mxu1 %v45_v25 }
 0x124   :  { %1160 = vmatmul.mubr.msk.f32.vlgmr.msra.gmra.mxu1 %vm23_vm1, %v46_v23 }
 0x1e2   :  { %v1154_v26 = vpop.f32.mrf.mxu0 }
 0x1e3   :  { %v145_v28 = vadd.f32 %v1154_v26, %v1063_v17 }
 0x1e4   :  { %v1161_v29 = vpop.f32.mrf.mxu1  ;;  %v135_v30 = vpop.f32.mrf.mxu0 }
 0x1e5   :  { %v144_v31 = vadd.f32 %v1062_v27, %v135_v30  ;;  %1169 = vmatprep.subr.msk.mxu1 %vm65_vm2, %v1161_v29  ;;  %1162 = vmatprep.subr.msk.mxu0 %vm65_vm2, %v145_v28 }
 0x1e6   :  { %v214_v32 = vpop.f32.mrf.mxu1  ;;  %1170 = vmatpush3.msk.msra.mxu1 %vm65_vm2, %v1161_v29  ;;  %1163 = vmatpush3.msk.msra.mxu0 %vm65_vm2, %v145_v28 }
 0x1e7   :  { %1166 = vmatprep.mubr.msk.f32.mxu0 %vm23_vm1, %v214_v32  ;;  %1171 = vmatprep.subr.mxu1 %v214_v32 }
 0x1e8   :  { %1173 = vmatprep.mubr.msk.f32.mxu1 %vm23_vm1, %v214_v32  ;;  %1164 = vmatprep.subr.mxu0 %v144_v31 }
 0x1e9   :  { %1172 = vmatpush3.msra.mxu1 %v214_v32  ;;  %1165 = vmatpush3.msra.mxu0 %v144_v31 }
 0x1ea   :  { %1174 = vmatmul.mubr.msk.f32.vlgmr.msra.gmra.mxu1 %vm23_vm1, %v1161_v29  ;;  %1167 = vmatmul.mubr.msk.f32.vlgmr.msra.gmra.mxu0 %vm23_vm1, %v1161_v29 }
 0x2aa   :  { %v1175_v33 = vpop.f32.mrf.mxu1  ;;  %v1168_v34 = vpop.f32.mrf.mxu0 }
 0x2ab   :  { %v308_v35 = vadd.f32 %v1168_v34, %v145_v28  ;;  %1183 = vmatprep.subr.msk.mxu1 %vm65_vm2, %v1175_v33 }
 0x2ac   :  { %v377_v36 = vpop.f32.mrf.mxu1  ;;  %1184 = vmatpush3.msk.msra.mxu1 %vm65_vm2, %v1175_v33  ;;  %v298_v37 = vpop.f32.mrf.mxu0 }
 0x2ad   :  { %v307_v38 = vadd.f32 %v298_v37, %v144_v31  ;;  %1180 = vmatprep.mubr.msk.f32.mxu0 %vm23_vm1, %v377_v36  ;;  %1185 = vmatprep.subr.mxu1 %v377_v36 }
 0x2ae   :  { %1187 = vmatprep.mubr.msk.f32.mxu1 %vm23_vm1, %v377_v36  ;;  %1176 = vmatprep.subr.msk.mxu0 %vm65_vm2, %v308_v35 }
 0x2af   :  { %1186 = vmatpush3.msra.mxu1 %v377_v36  ;;  %1177 = vmatpush3.msk.msra.mxu0 %vm65_vm2, %v308_v35 }
 0x2b0   :  { %1188 = vmatmul.mubr.msk.f32.vlgmr.msra.gmra.mxu1 %vm23_vm1, %v1175_v33  ;;  %1178 = vmatprep.subr.mxu0 %v307_v38 }
 0x2b1   :  { %1179 = vmatpush3.msra.mxu0 %v307_v38 }
 0x2b2   :  { %1181 = vmatmul.mubr.msk.f32.vlgmr.msra.gmra.mxu0 %vm23_vm1, %v1175_v33 }
 0x370   :  { %v1189_v39 = vpop.f32.mrf.mxu1 }
 0x371   :  { %1197 = vmatprep.subr.msk.mxu1 %vm65_vm2, %v1189_v39 }
 0x372   :  { %v540_v40 = vpop.f32.mrf.mxu1  ;;  %1198 = vmatpush3.msk.msra.mxu1 %vm65_vm2, %v1189_v39  ;;  %v1182_v41 = vpop.f32.mrf.mxu0 }
 0x373   :  { %v471_v42 = vadd.f32 %v1182_v41, %v308_v35  ;;  %1194 = vmatprep.mubr.msk.f32.mxu0 %vm23_vm1, %v540_v40  ;;  %1199 = vmatprep.subr.mxu1 %v540_v40 }
 0x374   :  { %1201 = vmatprep.mubr.msk.f32.mxu1 %vm23_vm1, %v540_v40  ;;  %1200 = vmatpush3.msra.mxu1 %v540_v40  ;;  %v461_v43 = vpop.f32.mrf.mxu0 }
 0x375   :  { %v470_v44 = vadd.f32 %v461_v43, %v307_v38  ;;  %1202 = vmatmul.mubr.msk.f32.vlgmr.msra.gmra.mxu1 %vm23_vm1, %v1189_v39  ;;  %1190 = vmatprep.subr.msk.mxu0 %vm65_vm2, %v471_v42 }
 0x376   :  { %1191 = vmatpush3.msk.msra.mxu0 %vm65_vm2, %v471_v42 }
 0x377   :  { %1192 = vmatprep.subr.mxu0 %v470_v44 }
 0x378   :  { %1193 = vmatpush3.msra.mxu0 %v470_v44 }
 0x379   :  { %1195 = vmatmul.mubr.msk.f32.vlgmr.msra.gmra.mxu0 %vm23_vm1, %v1189_v39 }
 0x435   :  { %v1203_v45 = vpop.f32.mrf.mxu1 }
 0x436   :  { %1211 = vmatprep.subr.msk.mxu1 %vm65_vm2, %v1203_v45 }
 0x437   :  { %v703_v46 = vpop.f32.mrf.mxu1  ;;  %1212 = vmatpush3.msk.msra.mxu1 %vm65_vm2, %v1203_v45 }
 0x438   :  { %1208 = vmatprep.mubr.msk.f32.mxu0 %vm23_vm1, %v703_v46  ;;  %1213 = vmatprep.subr.mxu1 %v703_v46 }
 0x439   :  { %1215 = vmatprep.mubr.msk.f32.mxu1 %vm23_vm1, %v703_v46  ;;  %1214 = vmatpush3.msra.mxu1 %v703_v46  ;;  %v1196_v47 = vpop.f32.mrf.mxu0 }
 0x43a   :  { %v634_v48 = vadd.f32 %v1196_v47, %v471_v42  ;;  %1216 = vmatmul.mubr.msk.f32.vlgmr.msra.gmra.mxu1 %vm23_vm1, %v1203_v45  ;;  %1225 = vmatprep.subr.mxu1 %v1266_v16 }
 0x43b   :  { %v624_v49 = vpop.f32.mrf.mxu0  ;;  %1229 = vmatprep.mubr.msk.f32.mxu1 %vm1268_vm6, %v1266_v16 }
 0x43c   :  { %v633_v50 = vadd.f32 %v624_v49, %v470_v44  ;;  %1204 = vmatprep.subr.msk.mxu0 %vm65_vm2, %v634_v48 }
 0x43d   :  { %1205 = vmatpush3.msk.msra.mxu0 %vm65_vm2, %v634_v48 }
 0x43e   :  { %1206 = vmatprep.subr.mxu0 %v633_v50 }
 0x43f   :  { %1207 = vmatpush3.msra.mxu0 %v633_v50 }
 0x440   :  { %1209 = vmatmul.mubr.msk.f32.vlgmr.msra.gmra.mxu0 %vm23_vm1, %v1203_v45  ;;  %1218 = vmatprep.subr.msk.mxu0 %vm65_vm2, %v471_v42 }
 0x441   :  { %1219 = vmatpush3.msk.msra.mxu0 %vm65_vm2, %v471_v42 }
 0x442   :  { %1220 = vmatprep.subr.mxu0 %v470_v44 }
 0x443   :  { %1221 = vmatpush3.msra.mxu0 %v470_v44 }
 0x4fa   :  { %v1217_v51 = vpop.f32.mrf.mxu1 }
 0x4fc   :  { %v866_v52 = vpop.f32.mrf.mxu1 }
 0x4fd   :  { %1222 = vmatprep.mubr.msk.f32.mxu0 %vm23_vm1, %v866_v52 }
 0x4fe   :  { %1223 = vmatmul.mubr.msk.f32.vlgmr.msra.gmra.mxu0 %vm23_vm1, %v1217_v51 }
 0x500   :  { %v1210_v53 = vpop.f32.mrf.mxu0 }
 0x501   :  { %v797_v55 = vadd.f32 %v1210_v53, %v634_v48 }
 0x502   :  { %v787_v54 = vpop.f32.mrf.mxu0 }
 0x503   :  { %v796_v59 = vadd.f32 %v787_v54, %v633_v50 }
 0x5be   :  { %v1224_v56 = vpop.f32.mrf.mxu0 }
 0x5bf   :  { %v957_v57 = vadd.f32 %v1224_v56, %v797_v55 }
 0x5c0   :  { %v947_v58 = vpop.f32.mrf.mxu0 }
 0x5c1   :  { %1226 = vmatpush3.xpose.msk.msra.mxu1 %vm23_vm1, %v957_v57  ;;  %v956_v60 = vadd.f32 %v947_v58, %v796_v59 }
 0x5c2   :  { %1227 = vmatprep.subr.mxu1 %v1266_v16 }
 0x5c5   :  { %1228 = vmatpush3.xpose.msk.msra.mxu1 %vm23_vm1, %v956_v60 }
 0x5c8   :  { %1230 = vmatmul.mubr.msk.f32.vlgmr.msra.gmra.mxu1 %vm23_vm1, %v47_v61 }
 0x688   :  { %v1033_v63 = vpop.f32.mrf.mxu1 }
 0x689   :  { %v1040_v0 = vrot.slane %v1033_v63, %v1039_v62 }
 0x68a   :  { %v1231_v1 = vpop.f32.mrf.mxu1 }
 0x68b   :  { %1041 = vst.msk [vmem:[#allocation2] sm:$0xff] %vm23_vm1, %v1040_v0 }
 0x68c   :  { %1254 = shalt.err (!%p1251_p4)
}
 0x68d   :  { %1053 = dma.vmem_to_hbm [thread:$0]  %s1051_s25, 128, %s1385_s3, [#allocation3]  }
 0x68e   :  { %1263 = dma.done.wait [#allocation3], 128  }
 0x68f   :  { %1264 = vsyncadd [#allocation3], 4294967168 }
 0x690   :  { %1061 = vsyncpa [#allocation3], 1 }

</bundles_post_ra>
